<compile_context>
chip_gen: v6e
topology: v6e:2x2x1
jax: 0.10.0
libtpu: 0.0.40
codegen_flags: <defaults>
</compile_context>

<pallas_src>
import functools

import jax
import jax.numpy as jnp
from jax.experimental import pallas as pl
from jax.experimental.pallas import tpu as pltpu


# ----------------------------- Pallas kernels ------------------------------

def _prop_layer_kernel(g_ref, cur_ref, acc_in_ref,
                       cur_out_ref, acc_out_ref, acc_sc,
                       *, tk, resident_cur):
    """One LightGCN propagation layer, tiled over (row panel, K).

    g_ref:       (tm, tk) bf16   tile of the normalized adjacency
    cur_ref:     (tk, D)  bf16   tile of current embeddings   (tiled variant)
                 (N,  D)  bf16   whole current embeddings     (resident variant)
    acc_in_ref:  (tm, D)  f32    running layer-sum (read at last K step)
    cur_out_ref: (tm, D)  bf16   G @ cur            (next layer's input)
    acc_out_ref: (tm, D)  f32    acc_in + G @ cur   (aliased onto acc_in)
    acc_sc:      (tm, D)  f32    VMEM accumulator scratch
    """
    k = pl.program_id(1)

    @pl.when(k == 0)
    def _():
        acc_sc[...] = jnp.zeros_like(acc_sc)

    if resident_cur:
        # cur is a single VMEM-resident (N, D) block (constant index_map ->
        # DMA'd once for the whole grid); slice the K panel out of it.
        off = pl.multiple_of(k * tk, tk)
        cur_blk = cur_ref[pl.ds(off, tk), :]
    else:
        cur_blk = cur_ref[...]

    # bf16 x bf16 on the MXU, f32 accumulation.
    acc_sc[...] += jnp.dot(g_ref[...], cur_blk,
                           preferred_element_type=jnp.float32)

    @pl.when(k == pl.num_programs(1) - 1)
    def _():
        res = acc_sc[...]
        cur_out_ref[...] = res.astype(cur_out_ref.dtype)
        acc_out_ref[...] = acc_in_ref[...] + res


def lightgcn_propagate_layer(graph_bf16, cur_bf16, acc_f32, *, tm, tk,
                             resident_cur, vmem_limit_bytes):
    """cur_{l+1} = G @ cur_l ; acc_{l+1} = acc_l + cur_{l+1} (one pallas_call)."""
    N, D = acc_f32.shape
    assert N % tm == 0 and N % tk == 0, (N, tm, tk)
    grid = (N // tm, N // tk)

    if resident_cur:
        # Full-array block, constant block index -> fetched once, held in VMEM.
        cur_spec = pl.BlockSpec((N, D), lambda i, k: (0, 0))
    else:
        cur_spec = pl.BlockSpec((tk, D), lambda i, k: (k, 0))

    kernel = functools.partial(_prop_layer_kernel, tk=tk,
                               resident_cur=resident_cur)

    return pl.pallas_call(
        kernel,
        out_shape=(
            jax.ShapeDtypeStruct((N, D), jnp.bfloat16),   # cur_{l+1}
            jax.ShapeDtypeStruct((N, D), jnp.float32),    # acc_{l+1}
        ),
        grid_spec=pltpu.PrefetchScalarGridSpec(
            num_scalar_prefetch=0,
            grid=grid,
            in_specs=[
                pl.BlockSpec((tm, tk), lambda i, k: (i, k)),   # G
                cur_spec,                                      # cur
                pl.BlockSpec((tm, D), lambda i, k: (i, 0)),    # acc_in
            ],
            out_specs=[
                pl.BlockSpec((tm, D), lambda i, k: (i, 0)),    # cur_out
                pl.BlockSpec((tm, D), lambda i, k: (i, 0)),    # acc_out
            ],
            scratch_shapes=[pltpu.VMEM((tm, D), jnp.float32)],
        ),
        # acc_in (input 2) -> acc_out (output 1).  Safe: acc_in[i] is read
        # before acc_out[i] is written within the same row panel.  Do NOT
        # alias cur: later row panels still read the old cur rows.
        input_output_aliases={2: 1},
        compiler_params=pltpu.CompilerParams(
            # Row panels shard across TensorCores (2x on v7x, no-op on
            # v5e/v6e); K is the reduction axis and must stay sequential.
            dimension_semantics=("parallel", "arbitrary"),
            vmem_limit_bytes=vmem_limit_bytes),
    )(graph_bf16, cur_bf16, acc_f32)


# --------------------------- tile / VMEM planning ---------------------------

def _physical_vmem_bytes():
    try:
        return int(pltpu.get_tpu_info().vmem_capacity_bytes)
    except Exception:
        return 64 << 20   # conservative fallback: v7x per-TensorCore VMEM


def _divisors(n, cands):
    out = [c for c in cands if c <= n and n % c == 0]
    return out if out else [n]   # full-dim block is always layout-legal


def _vmem_need_bytes(N, D, tm, tk, resident_cur):
    g_bufs = 2 * tm * tk * 2                                   # bf16, 2 bufs
    cur_bufs = (2 * N * D * 2) if resident_cur else (2 * tk * D * 2)
    io_bufs = 2 * tm * D * (4 + 2 + 4)                         # acc_in/cur_out/acc_out
    return g_bufs + cur_bufs + io_bufs + tm * D * 4            # + acc scratch


def _plan(N, D, phys_vmem_bytes):
    """Pick (tm, tk, resident_cur) against the per-generation VMEM budget."""
    budget = phys_vmem_bytes - (8 << 20)        # headroom for Mosaic internals
    # tm: sublane dim of G / output row panel -> multiples of 8 (or N), big
    #     first (HBM-bound: large tm cuts the cur/acc re-stream share).
    tm_cands = _divisors(N, (2048, 1024, 512, 256, 128, 64, 32, 16, 8))
    # tk: lane dim of the G tile -> multiples of 128 (or N) only.
    tk_cands = _divisors(N, (1024, 512, 256, 128))
    for resident in (True, False):              # prefer zero cur re-stream
        for tm in tm_cands:
            for tk in tk_cands:
                if _vmem_need_bytes(N, D, tm, tk, resident) <= budget:
                    return tm, tk, resident
    raise ValueError(f"no tile configuration fits VMEM for N={N}, D={D}")


# ------------------------------ model wrapper -------------------------------

@functools.partial(jax.jit,
                   static_argnames=("n_layers", "tm", "tk", "resident_cur"))
def lightgcn_forward(user_table, item_table, graph_bf16, users, items, *,
                     n_layers, tm=None, tk=None, resident_cur=None):
    """Equivalent of LightGCN.forward(users, items) (eval mode)."""
    num_users = user_table.shape[0]
    all_emb = jnp.concatenate([user_table, item_table], axis=0)   # (N, D) f32
    N, D = all_emb.shape

    phys = _physical_vmem_bytes()
    if tm is None or tk is None or resident_cur is None:
        p_tm, p_tk, p_res = _plan(N, D, phys)
        tm = p_tm if tm is None else tm
        tk = p_tk if tk is None else tk
        resident_cur = p_res if resident_cur is None else resident_cur
    need = _vmem_need_bytes(N, D, tm, tk, resident_cur)
    vmem_limit = int(min(phys - (4 << 20), max(need + (8 << 20), 32 << 20)))

    # LightGCN.computer(): running layer-sum, kept un-normalized here.
    # NOTE: cur is re-quantized to bf16 every layer (intentional: halves the
    # dominant HBM streams); error compounds mildly with n_layers.
    cur = all_emb.astype(jnp.bfloat16)
    acc = all_emb
    for _ in range(n_layers):
        cur, acc = lightgcn_propagate_layer(
            graph_bf16, cur, acc, tm=tm, tk=tk,
            resident_cur=resident_cur, vmem_limit_bytes=vmem_limit)

    # Gather + per-pair row dot stays in XLA: a dedicated pallas_call here is
    # fixed-overhead dominated with a lane-width-1 output.  The 1/(n_layers+1)
    # mean (torch.mean(embs, dim=1)) is folded into the tiny (B,) result
    # instead of a full (N, D) pass over light_out.
    users_emb = acc[:num_users][users]            # (B, D)
    items_emb = acc[num_users:][items]            # (B, D)
    inv = 1.0 / float(n_layers + 1)
    return jnp.sum(users_emb * items_emb, axis=1) * (inv * inv)


def build_norm_graph(key, n_users, m_items):
    """Dense version of dataset.getSparseGraph(): D^-1/2 [[0,R],[R^T,0]] D^-1/2."""
    R = (jax.random.uniform(key, (n_users, m_items)) < 0.15).astype(jnp.float32)
    N = n_users + m_items
    A = jnp.zeros((N, N), jnp.float32)
    A = A.at[:n_users, n_users:].set(R)
    A = A.at[n_users:, :n_users].set(R.T)
    deg = A.sum(axis=1)
    d_inv_sqrt = jnp.where(deg > 0.0, 1.0 / jnp.sqrt(deg), 0.0)
    return A * d_inv_sqrt[:, None] * d_inv_sqrt[None, :]


# ---------------------------------- main ------------------------------------

if __name__ == "__main__":
    # Small, TPU-friendly shapes consistent with the module's __init_weight.
    n_users, m_items = 128, 128        # dataset.n_users, dataset.m_items
    latent_dim = 128                   # config['latent_dim_rec'] (lane-dense)
    n_layers = 3                       # config['lightGCN_n_layers']
    batch = 16                         # len(users) == len(items)

    key = jax.random.PRNGKey(0)
    k_u, k_i, k_g, k_uid, k_iid = jax.random.split(key, 5)

    # nn.init.normal_(embedding.weight, std=0.1)
    user_table = 0.1 * jax.random.normal(k_u, (n_users, latent_dim), jnp.float32)
    item_table = 0.1 * jax.random.normal(k_i, (m_items, latent_dim), jnp.float32)
    graph_f32 = build_norm_graph(k_g, n_users, m_items)
    graph_bf16 = graph_f32.astype(jnp.bfloat16)   # stream G at half the bytes

    users = jax.random.randint(k_uid, (batch,), 0, n_users, dtype=jnp.int32)
    items = jax.random.randint(k_iid, (batch,), 0, m_items, dtype=jnp.int32)

    # Primary run: explicit small tiles so the demo exercises the (row, K)
    # grid (2x2), the pl.when init/writeback and the resident-cur slicing.
    gamma = lightgcn_forward(user_table, item_table, graph_bf16, users, items,
                             n_layers=n_layers, tm=128, tk=128,
                             resident_cur=True)
    gamma = jax.block_until_ready(gamma)
    assert gamma.shape == (batch,)

    # Fallback path (tiled cur re-stream) must agree with the resident path.
    gamma_tiled = lightgcn_forward(user_table, item_table, graph_bf16, users,
                                   items, n_layers=n_layers, tm=128, tk=128,
                                   resident_cur=False)
    gamma_tiled = jax.block_until_ready(gamma_tiled)
    assert jnp.allclose(gamma, gamma_tiled, atol=1e-5, rtol=1e-5), (
        float(jnp.max(jnp.abs(gamma - gamma_tiled))))

    # Auto-planned tiles (what realistic shapes would use).
    gamma_auto = lightgcn_forward(user_table, item_table, graph_bf16, users,
                                  items, n_layers=n_layers)
    gamma_auto = jax.block_until_ready(gamma_auto)

    # Reference 1: mirrors the kernel's precision choices (bf16 G / bf16 cur
    # into the MXU, f32 accumulation) -> tight tolerance.
    g32 = graph_bf16.astype(jnp.float32)
    all_emb = jnp.concatenate([user_table, item_table], axis=0)
    cur = all_emb.astype(jnp.bfloat16)
    acc = all_emb
    for _ in range(n_layers):
        res = jnp.dot(g32, cur.astype(jnp.float32),
                      preferred_element_type=jnp.float32)
        acc = acc + res
        cur = res.astype(jnp.bfloat16)
    light_ref = acc / float(n_layers + 1)
    ref = jnp.sum(light_ref[:n_users][users] * light_ref[n_users:][items],
                  axis=1)
    assert jnp.allclose(gamma, ref, atol=1e-4, rtol=1e-4), (
        float(jnp.max(jnp.abs(gamma - ref))))
    assert jnp.allclose(gamma_auto, ref, atol=1e-4, rtol=1e-4), (
        float(jnp.max(jnp.abs(gamma_auto - ref))))

    # Reference 2: original full-f32 module semantics; loose tolerance for the
    # bf16 graph/cur streams.
    cur32, acc32 = all_emb, all_emb
    for _ in range(n_layers):
        cur32 = graph_f32 @ cur32
        acc32 = acc32 + cur32
    light32 = acc32 / float(n_layers + 1)
    ref32 = jnp.sum(light32[:n_users][users] * light32[n_users:][items], axis=1)
    assert jnp.allclose(gamma, ref32, atol=5e-2, rtol=5e-2), (
        float(jnp.max(jnp.abs(gamma - ref32))))

    print("KERNEL_OK")
</pallas_src>

<mosaic_0001>
module attributes {stable_mosaic.version = 11 : i64} {
  func.func @_prop_layer_kernel(%arg0: i32, %arg1: i32, %arg2: memref<128x128xbf16, #tpu.memory_space<vmem>>, %arg3: memref<256x128xbf16, #tpu.memory_space<vmem>>, %arg4: memref<128x128xf32, #tpu.memory_space<vmem>>, %arg5: memref<128x128xbf16, #tpu.memory_space<vmem>>, %arg6: memref<128x128xf32, #tpu.memory_space<vmem>>, %arg7: memref<128x128xf32, #tpu.memory_space<vmem>>) attributes {dimension_semantics = [#tpu.dimension_semantics<parallel>, #tpu.dimension_semantics<arbitrary>], iteration_bounds = array<i64: 2, 2>, scalar_prefetch = 0 : i64, scratch_operands = 1 : i64, tpu.core_type = #tpu.core_type<tc>, window_params = [{transform_indices = @transform_0, window_bounds = array<i64: 128, 128>}, {pipeline_mode = #tpu.pipeline_mode<synchronous>, transform_indices = @transform_1, window_bounds = array<i64: 256, 128>}, {transform_indices = @transform_2, window_bounds = array<i64: 128, 128>}, {transform_indices = @transform_3, window_bounds = array<i64: 128, 128>}, {transform_indices = @transform_4, window_bounds = array<i64: 128, 128>}]} {
    %c0_i32 = arith.constant 0 : i32
    %0 = arith.cmpi eq, %arg1, %c0_i32 : i32
    %1 = arith.extui %0 : i1 to i32
    %c0_i32_0 = arith.constant 0 : i32
    %2 = arith.cmpi ne, %1, %c0_i32_0 : i32
    scf.if %2 {
      %cst_8 = arith.constant 0.000000e+00 : f32
      %15 = vector.broadcast %cst_8 : f32 to vector<128x128xf32>
      %c0_9 = arith.constant 0 : index
      %c0_10 = arith.constant 0 : index
      %16 = vector.load %arg7[%c0_9, %c0_10] : memref<128x128xf32, #tpu.memory_space<vmem>>, vector<128x128xf32>
      tpu.vector_store %arg7[%c0_9, %c0_10], %15 {strides = array<i32>} : memref<128x128xf32, #tpu.memory_space<vmem>>, vector<128x128xf32>,
    } else {
    }
    %c128_i32 = arith.constant 128 : i32
    %3 = arith.muli %arg1, %c128_i32 : i32
    %4 = tpu.assume_multiple %3, 128 : i32
    %5 = arith.index_cast %4 : i32 to index
    %c0 = arith.constant 0 : index
    %6 = vector.load %arg3[%5, %c0] : memref<256x128xbf16, #tpu.memory_space<vmem>>, vector<128x128xbf16>
    %c0_1 = arith.constant 0 : index
    %c0_2 = arith.constant 0 : index
    %7 = vector.load %arg7[%c0_1, %c0_2] : memref<128x128xf32, #tpu.memory_space<vmem>>, vector<128x128xf32>
    %c0_3 = arith.constant 0 : index
    %c0_4 = arith.constant 0 : index
    %8 = vector.load %arg2[%c0_3, %c0_4] : memref<128x128xbf16, #tpu.memory_space<vmem>>, vector<128x128xbf16>
    %cst = arith.constant dense<0.000000e+00> : vector<128x128xf32>
    %9 = tpu.matmul %8, %6, %cst {dimension_numbers = #tpu.dot_dimension_numbers<[1], [0], [0], [1], [0, 0, 1, 1], [], []>} : vector<128x128xbf16>, vector<128x128xbf16>, vector<128x128xf32> -> vector<128x128xf32>
    %10 = arith.addf %7, %9 : vector<128x128xf32>
    %c0_5 = arith.constant 0 : index
    %c0_6 = arith.constant 0 : index
    %11 = vector.load %arg7[%c0_5, %c0_6] : memref<128x128xf32, #tpu.memory_space<vmem>>, vector<128x128xf32>
    tpu.vector_store %arg7[%c0_5, %c0_6], %10 {strides = array<i32>} : memref<128x128xf32, #tpu.memory_space<vmem>>, vector<128x128xf32>,
    %c1_i32 = arith.constant 1 : i32
    %12 = arith.cmpi eq, %arg1, %c1_i32 : i32
    %13 = arith.extui %12 : i1 to i32
    %c0_i32_7 = arith.constant 0 : i32
    %14 = arith.cmpi ne, %13, %c0_i32_7 : i32
    scf.if %14 {
      %c0_8 = arith.constant 0 : index
      %c0_9 = arith.constant 0 : index
      %15 = vector.load %arg7[%c0_8, %c0_9] : memref<128x128xf32, #tpu.memory_space<vmem>>, vector<128x128xf32>
      %16 = arith.truncf %15 : vector<128x128xf32> to vector<128x128xbf16>
      %c0_10 = arith.constant 0 : index
      %c0_11 = arith.constant 0 : index
      %17 = vector.load %arg5[%c0_10, %c0_11] : memref<128x128xbf16, #tpu.memory_space<vmem>>, vector<128x128xbf16>
      tpu.vector_store %arg5[%c0_10, %c0_11], %16 {strides = array<i32>} : memref<128x128xbf16, #tpu.memory_space<vmem>>, vector<128x128xbf16>,
      %c0_12 = arith.constant 0 : index
      %c0_13 = arith.constant 0 : index
      %18 = vector.load %arg4[%c0_12, %c0_13] : memref<128x128xf32, #tpu.memory_space<vmem>>, vector<128x128xf32>
      %19 = arith.addf %18, %15 : vector<128x128xf32>
      %c0_14 = arith.constant 0 : index
      %c0_15 = arith.constant 0 : index
      %20 = vector.load %arg6[%c0_14, %c0_15] : memref<128x128xf32, #tpu.memory_space<vmem>>, vector<128x128xf32>
      tpu.vector_store %arg6[%c0_14, %c0_15], %19 {strides = array<i32>} : memref<128x128xf32, #tpu.memory_space<vmem>>, vector<128x128xf32>,
    } else {
    }
    return
  }
  func.func @transform_0(%arg0: i32, %arg1: i32) -> (i32, i32) {
    %c0_i32 = arith.constant 0 : i32
    return %arg0, %arg1 : i32, i32
  }
  func.func @transform_1(%arg0: i32, %arg1: i32) -> (i32, i32) {
    %c0_i32 = arith.constant 0 : i32
    %c0_i32_0 = arith.constant 0 : i32
    %c0_i32_1 = arith.constant 0 : i32
    return %c0_i32, %c0_i32_0 : i32, i32
  }
  func.func @transform_2(%arg0: i32, %arg1: i32) -> (i32, i32) {
    %c0_i32 = arith.constant 0 : i32
    %c0_i32_0 = arith.constant 0 : i32
    return %arg0, %c0_i32 : i32, i32
  }
  func.func @transform_3(%arg0: i32, %arg1: i32) -> (i32, i32) {
    %c0_i32 = arith.constant 0 : i32
    %c0_i32_0 = arith.constant 0 : i32
    return %arg0, %c0_i32 : i32, i32
  }
  func.func @transform_4(%arg0: i32, %arg1: i32) -> (i32, i32) {
    %c0_i32 = arith.constant 0 : i32
    %c0_i32_0 = arith.constant 0 : i32
    return %arg0, %c0_i32 : i32, i32
  }
}

module attributes {stable_mosaic.version = 11 : i64} {
  func.func @_prop_layer_kernel(%arg0: i32, %arg1: i32, %arg2: memref<128x128xbf16, #tpu.memory_space<vmem>>, %arg3: memref<256x128xbf16, #tpu.memory_space<vmem>>, %arg4: memref<128x128xf32, #tpu.memory_space<vmem>>, %arg5: memref<128x128xbf16, #tpu.memory_space<vmem>>, %arg6: memref<128x128xf32, #tpu.memory_space<vmem>>, %arg7: memref<128x128xf32, #tpu.memory_space<vmem>>) attributes {dimension_semantics = [#tpu.dimension_semantics<parallel>, #tpu.dimension_semantics<arbitrary>], iteration_bounds = array<i64: 2, 2>, scalar_prefetch = 0 : i64, scratch_operands = 1 : i64, tpu.core_type = #tpu.core_type<tc>, window_params = [{transform_indices = @transform_0, window_bounds = array<i64: 128, 128>}, {pipeline_mode = #tpu.pipeline_mode<synchronous>, transform_indices = @transform_1, window_bounds = array<i64: 256, 128>}, {transform_indices = @transform_2, window_bounds = array<i64: 128, 128>}, {transform_indices = @transform_3, window_bounds = array<i64: 128, 128>}, {transform_indices = @transform_4, window_bounds = array<i64: 128, 128>}]} {
    %c0_i32 = arith.constant 0 : i32
    %0 = arith.cmpi eq, %arg1, %c0_i32 : i32
    %1 = arith.extui %0 : i1 to i32
    %c0_i32_0 = arith.constant 0 : i32
    %2 = arith.cmpi ne, %1, %c0_i32_0 : i32
    scf.if %2 {
      %cst_8 = arith.constant 0.000000e+00 : f32
      %15 = vector.broadcast %cst_8 : f32 to vector<128x128xf32>
      %c0_9 = arith.constant 0 : index
      %c0_10 = arith.constant 0 : index
      %16 = vector.load %arg7[%c0_9, %c0_10] : memref<128x128xf32, #tpu.memory_space<vmem>>, vector<128x128xf32>
      tpu.vector_store %arg7[%c0_9, %c0_10], %15 {strides = array<i32>} : memref<128x128xf32, #tpu.memory_space<vmem>>, vector<128x128xf32>,
    } else {
    }
    %c128_i32 = arith.constant 128 : i32
    %3 = arith.muli %arg1, %c128_i32 : i32
    %4 = tpu.assume_multiple %3, 128 : i32
    %5 = arith.index_cast %4 : i32 to index
    %c0 = arith.constant 0 : index
    %6 = vector.load %arg3[%5, %c0] : memref<256x128xbf16, #tpu.memory_space<vmem>>, vector<128x128xbf16>
    %c0_1 = arith.constant 0 : index
    %c0_2 = arith.constant 0 : index
    %7 = vector.load %arg7[%c0_1, %c0_2] : memref<128x128xf32, #tpu.memory_space<vmem>>, vector<128x128xf32>
    %c0_3 = arith.constant 0 : index
    %c0_4 = arith.constant 0 : index
    %8 = vector.load %arg2[%c0_3, %c0_4] : memref<128x128xbf16, #tpu.memory_space<vmem>>, vector<128x128xbf16>
    %cst = arith.constant dense<0.000000e+00> : vector<128x128xf32>
    %9 = tpu.matmul %8, %6, %cst {dimension_numbers = #tpu.dot_dimension_numbers<[1], [0], [0], [1], [0, 0, 1, 1], [], []>} : vector<128x128xbf16>, vector<128x128xbf16>, vector<128x128xf32> -> vector<128x128xf32>
    %10 = arith.addf %7, %9 : vector<128x128xf32>
    %c0_5 = arith.constant 0 : index
    %c0_6 = arith.constant 0 : index
    %11 = vector.load %arg7[%c0_5, %c0_6] : memref<128x128xf32, #tpu.memory_space<vmem>>, vector<128x128xf32>
    tpu.vector_store %arg7[%c0_5, %c0_6], %10 {strides = array<i32>} : memref<128x128xf32, #tpu.memory_space<vmem>>, vector<128x128xf32>,
    %c1_i32 = arith.constant 1 : i32
    %12 = arith.cmpi eq, %arg1, %c1_i32 : i32
    %13 = arith.extui %12 : i1 to i32
    %c0_i32_7 = arith.constant 0 : i32
    %14 = arith.cmpi ne, %13, %c0_i32_7 : i32
    scf.if %14 {
      %c0_8 = arith.constant 0 : index
      %c0_9 = arith.constant 0 : index
      %15 = vector.load %arg7[%c0_8, %c0_9] : memref<128x128xf32, #tpu.memory_space<vmem>>, vector<128x128xf32>
      %16 = arith.truncf %15 : vector<128x128xf32> to vector<128x128xbf16>
      %c0_10 = arith.constant 0 : index
      %c0_11 = arith.constant 0 : index
      %17 = vector.load %arg5[%c0_10, %c0_11] : memref<128x128xbf16, #tpu.memory_space<vmem>>, vector<128x128xbf16>
      tpu.vector_store %arg5[%c0_10, %c0_11], %16 {strides = array<i32>} : memref<128x128xbf16, #tpu.memory_space<vmem>>, vector<128x128xbf16>,
      %c0_12 = arith.constant 0 : index
      %c0_13 = arith.constant 0 : index
      %18 = vector.load %arg4[%c0_12, %c0_13] : memref<128x128xf32, #tpu.memory_space<vmem>>, vector<128x128xf32>
      %19 = arith.addf %18, %15 : vector<128x128xf32>
      %c0_14 = arith.constant 0 : index
      %c0_15 = arith.constant 0 : index
      %20 = vector.load %arg6[%c0_14, %c0_15] : memref<128x128xf32, #tpu.memory_space<vmem>>, vector<128x128xf32>
      tpu.vector_store %arg6[%c0_14, %c0_15], %19 {strides = array<i32>} : memref<128x128xf32, #tpu.memory_space<vmem>>, vector<128x128xf32>,
    } else {
    }
    return
  }
  func.func @transform_0(%arg0: i32, %arg1: i32) -> (i32, i32) {
    %c0_i32 = arith.constant 0 : i32
    return %arg0, %arg1 : i32, i32
  }
  func.func @transform_1(%arg0: i32, %arg1: i32) -> (i32, i32) {
    %c0_i32 = arith.constant 0 : i32
    %c0_i32_0 = arith.constant 0 : i32
    %c0_i32_1 = arith.constant 0 : i32
    return %c0_i32, %c0_i32_0 : i32, i32
  }
  func.func @transform_2(%arg0: i32, %arg1: i32) -> (i32, i32) {
    %c0_i32 = arith.constant 0 : i32
    %c0_i32_0 = arith.constant 0 : i32
    return %arg0, %c0_i32 : i32, i32
  }
  func.func @transform_3(%arg0: i32, %arg1: i32) -> (i32, i32) {
    %c0_i32 = arith.constant 0 : i32
    %c0_i32_0 = arith.constant 0 : i32
    return %arg0, %c0_i32 : i32, i32
  }
  func.func @transform_4(%arg0: i32, %arg1: i32) -> (i32, i32) {
    %c0_i32 = arith.constant 0 : i32
    %c0_i32_0 = arith.constant 0 : i32
    return %arg0, %c0_i32 : i32, i32
  }
}

</mosaic_0001>

<bundles_post_ra>
// kernel: lightgcn_forward.5
= control target key start
LH: loop header
LB: loop body
LE: loop exit
PB: predicated region body
PF: predicated region fallthrough
CT: control target
= control target key end

     0   :  { %s1644_s0 = inlined_call_operand.vmem [shape: bf16[256,256], index: 0, kind: input, shape index: {}]   ;;  %s1645_s1 = inlined_call_operand.vmem [shape: bf16[256,128], index: 1, kind: input, shape index: {}]   ;;  %s1646_s2 = inlined_call_operand.vmem [shape: f32[256,128], index: 2, kind: input, shape index: {}, may-alias: {2,4}]   ;;  %s1647_s3 = inlined_call_operand.hbm [shape: bf16[256,128], index: 3, kind: output, shape index: {0}]   ;;  %s1648_s4 = inlined_call_operand.vmem [shape: f32[256,128], index: 4, kind: output, shape index: {1}, may-alias: {2,4}]  }
   0x1   :  { %1651 = sst [smem:[#allocation9_spill]] %s1644_s0 }
   0x2   :  { %10 = vsyncpa [#allocation5], 0 }
   0x3   :  { %12 = vsyncpa [#allocation5 + $0x1], 0  ;;  %s1374_s15 = smov 0   ;;  %s1376_s16 = smov 0  }
   0x4   :  { %s1378_s17 = smov 0   ;;  %s1380_s18 = smov 0  }
   0x5   :  { %s1382_s19 = smov 0   ;;  %s1384_s20 = smov 0  }
   0x6   :  { %s1386_s21 = smov 0   ;;  %s1388_s22 = smov 0  }
   0x7   :  { %s1390_s23 = smov 0   ;;  %s1392_s24 = smov 0  }
   0x8 LB: > { %s944_s25 = sadd.s32 4294967295, %s1343_s24   ;;  %s945_s26 = sadd.s32 4294967294, %s1343_s24   ;;  %s1343_s24 = sphi %s1392_s24, %s18_s24   ;;  %s1339_s23 = sphi %s1390_s23, %s1668_s23   ;;  %s1335_s22 = sphi %s1388_s22, %s1667_s22   ;;  %s1331_s21 = sphi %s1386_s21, %s1666_s21   ;;  %s1327_s20 = sphi %s1384_s20, %s1665_s20   ;;  %s1323_s19 = sphi %s1382_s19, %s1664_s19   ;;  %s1319_s18 = sphi %s1380_s18, %s1663_s18   ;;  %s1315_s17 = sphi %s1378_s17, %s1662_s17   ;;  %s1311_s16 = sphi %s1376_s16, %s1661_s16   ;;  %s1307_s15 = sphi %s1374_s15, %s1660_s15  }
   0x9   : > { %s27_s27 = sadd.s32 1, %s1335_s22  ;;  %s30_s28 = sadd.s32 1, %s1339_s23 }
   0xa   : > { %p28_p0 = scmp.ge.s32.totalorder %s27_s27, 2  ;;  %s39_s29 = sadd.s32 1, %s1323_s19 }
   0xb   : > { %p46_p1 = scmp.ne.s32.totalorder %s1323_s19, %s1319_s18  ;;  %p47_p2 = scmp.eq.s32.totalorder %s1343_s24, 0 }
   0xc   : > { %s1670_s27 = smov (%p28_p0, %s27_s27), 0  ;;  %s1672_s28 = smov (!%p28_p0, %s30_s28), %s1339_s23 }
   0xd   : > { %1652 = sst [smem:[#allocation7_spill]] %s1670_s27  ;;  %s35_s30 = ssub.s32 %s1335_s22, %s1670_s27 }
   0xe   : > { %p1437_p3 = por %p47_p2, %p46_p1  ;;  %p32_p4 = scmp.ge.s32.totalorder %s1672_s28, 2 }
   0xf   : > { %s112_s6 = sadd.s32 1, %s1315_s17  ;;  %p122_p5 = scmp.ne.s32.totalorder %s1315_s17, %s1311_s16 }
  0x10   : > { %p123_p6 = scmp.eq.s32.totalorder %s944_s25, 3  ;;  %s1674_s28 = smov (%p32_p4, %s1672_s28), 0 }
  0x11   : > { %1654 = sst [smem:[#allocation8_spill]] %s1674_s28  ;;  %p128_p8 = scmp.ne.s32.totalorder %s1311_s16, %s1307_s15 }
  0x12   : > { %p1446_p7 = por %p123_p6, %p122_p5  ;;  %s34_s8 = ssub.s32 %s1339_s23, %s1674_s28 }
  0x13   : > { %p129_p9 = scmp.eq.s32.totalorder %s945_s26, 3  ;;  %s36_s9 = sor.u32 %s35_s30, %s34_s8 }
  0x14   : > { %p110_p10 = scmp.eq.s32.totalorder %s34_s8, 0  ;;  %p37_p11 = scmp.eq.s32.totalorder %s36_s9, 0 }
  0x15   : > { %p1454_p12 = por %p129_p9, %p128_p8  ;;  %p947_p13 = scmp.ge.s32.totalorder %s1343_s24, 4 }
  0x16   : > { %s1459_s11 = scalar_select %p110_p10, %s1315_s17, %s112_s6  }
  0x17   : > { %s1462_s12 = scalar_select %p37_p11, %s1323_s19, %s39_s29  }
  0x18   : > { %174 = sbr.rel (%p947_p13) target bundleno = 49 (0x31), region = 20 }
  0x1d   : > { %177 = sbr.rel (!%p1437_p3) target bundleno = 49 (0x31), region = 24  ;;  %s179_s13 = sand.u32 (%p1437_p3), 1, %s1323_s19  }
  0x1e   : > { %s1000_s14 = sshll.u32 (%p1437_p3), %s1339_s23, 5  ;;  %s948_s25 = sshll.u32 (%p1437_p3), %s179_s13, 6 }
  0x1f   : > { %s184_s26 = sadd.s32 (%p1437_p3), %s1335_s22, %s1000_s14  ;;  %s1657_s0 = sld [smem:[#allocation9_spill]] (%p1437_p3) }
  0x20   : > { %s951_s30 = sshll.u32 (%p1437_p3), %s184_s26, 2  ;;  %s181_s29 = scalar_lea.vmem (%p1437_p3), [#allocation3], %s948_s25 }
  0x25   : > { %s1473_s6 = scalar_lea.vmem %s1657_s0, %s951_s30 }
  0x26   : > { %v203_v0 = vld [vmem:[%s1473_s6] sm:$0xf]  ;;  %v205_v1 = vld [vmem:[%s1473_s6 + $0x8] sm:$0xf]  ;;  %v207_v2 = vld [vmem:[%s1473_s6 + $0x10] sm:$0xf] }
  0x27   : > { %204 = vst [vmem:[%s181_s29] sm:$0xf] %v203_v0  ;;  %206 = vst [vmem:[%s181_s29 + $0x4] sm:$0xf] %v205_v1  ;;  %v209_v3 = vld [vmem:[%s1473_s6 + $0x18] sm:$0xf] }
  0x28   : > { %208 = vst [vmem:[%s181_s29 + $0x8] sm:$0xf] %v207_v2  ;;  %v211_v4 = vld [vmem:[%s1473_s6 + $0x20] sm:$0xf]  ;;  %v213_v5 = vld [vmem:[%s1473_s6 + $0x28] sm:$0xf] }
  0x29   : > { %210 = vst [vmem:[%s181_s29 + $0xc] sm:$0xf] %v209_v3  ;;  %212 = vst [vmem:[%s181_s29 + $0x10] sm:$0xf] %v211_v4  ;;  %v215_v6 = vld [vmem:[%s1473_s6 + $0x30] sm:$0xf] }
  0x2a   : > { %214 = vst [vmem:[%s181_s29 + $0x14] sm:$0xf] %v213_v5  ;;  %v217_v7 = vld [vmem:[%s1473_s6 + $0x38] sm:$0xf]  ;;  %v219_v8 = vld [vmem:[%s1473_s6 + $0x40] sm:$0xf] }
  0x2b   : > { %216 = vst [vmem:[%s181_s29 + $0x18] sm:$0xf] %v215_v6  ;;  %218 = vst [vmem:[%s181_s29 + $0x1c] sm:$0xf] %v217_v7  ;;  %v221_v9 = vld [vmem:[%s1473_s6 + $0x48] sm:$0xf] }
  0x2c   : > { %220 = vst [vmem:[%s181_s29 + $0x20] sm:$0xf] %v219_v8  ;;  %v223_v10 = vld [vmem:[%s1473_s6 + $0x50] sm:$0xf]  ;;  %v225_v11 = vld [vmem:[%s1473_s6 + $0x58] sm:$0xf] }
  0x2d   : > { %222 = vst [vmem:[%s181_s29 + $0x24] sm:$0xf] %v221_v9  ;;  %224 = vst [vmem:[%s181_s29 + $0x28] sm:$0xf] %v223_v10  ;;  %v227_v12 = vld [vmem:[%s1473_s6 + $0x60] sm:$0xf] }
  0x2e   : > { %226 = vst [vmem:[%s181_s29 + $0x2c] sm:$0xf] %v225_v11  ;;  %v229_v13 = vld [vmem:[%s1473_s6 + $0x68] sm:$0xf]  ;;  %v231_v14 = vld [vmem:[%s1473_s6 + $0x70] sm:$0xf] }
  0x2f   : > { %228 = vst [vmem:[%s181_s29 + $0x30] sm:$0xf] %v227_v12  ;;  %230 = vst [vmem:[%s181_s29 + $0x34] sm:$0xf] %v229_v13  ;;  %v233_v15 = vld [vmem:[%s1473_s6 + $0x78] sm:$0xf] }
  0x30   : > { %232 = vst [vmem:[%s181_s29 + $0x38] sm:$0xf] %v231_v14  ;;  %234 = vst [vmem:[%s181_s29 + $0x3c] sm:$0xf] %v233_v15 }
  0x31 PF: > { %p952_p0 = scmp.ge.s32.totalorder %s1343_s24, 1  ;;  %p298_p1 = scmp.lt.s32.totalorder %s1343_s24, 5 }
  0x33   : > { %p299_p2 = pnand %p952_p0, %p298_p1 }
  0x34   : > { %s305_s5 = sand.u32 (!%p299_p2), 1, %s1319_s18   ;;  %s330_s13 = sand.u32 (!%p299_p2), 1, %s1311_s16  }
  0x35   : > { %302 = sbr.rel (%p299_p2) target bundleno = 363 (0x16b), region = 69  ;;  %s953_s14 = sshll.u32 (!%p299_p2), %s305_s5, 6 }
  0x36   : > { %s954_s25 = sshll.u32 (!%p299_p2), %s330_s13, 6  ;;  %s955_s26 = sshll.u32 (!%p299_p2), %s1331_s21, 4 }
  0x37   : > { %p342_p3 = scmp.lt.s32.totalorder (!%p299_p2), %s955_s26, 31  ;;  %s1508_s27 = scalar_lea.vmem (!%p299_p2), [#allocation3], %s953_s14 }
  0x38   : > { %s1510_s18 = scalar_lea.vmem (!%p299_p2), [#allocation4], %s954_s25  ;;  %p959_p4 = scmp.ne.s32.totalorder (!%p299_p2), %s1327_s20, 0 }
  0x3a   : > { %s1676_s26 = smov (!%p342_p3, %s955_s26), 31  ;;  %358 = sbr.rel (%p959_p4) target bundleno = 72 (0x48), region = 77 }
  0x3b   : > { %s956_s30 = sshll.u32 %s1676_s26, 3 }
  0x3c   : > { %s1501_s6 = scalar_lea.vmem %s1646_s2, %s956_s30  ;;  %s1506_s28 = scalar_lea.vmem %s1648_s4, %s956_s30 }
  0x3f   : > { %v1345_v16 = vmov 0.0  }
  0x40   : > { %359 = vst [vmem:[#allocation2 + $0x30] sm:$0xff] %v1345_v16  ;;  %360 = vst [vmem:[#allocation2] sm:$0xff] %v1345_v16 }
  0x41   : > { %361 = vst [vmem:[#allocation2 + $0x58] sm:$0xff] %v1345_v16  ;;  %362 = vst [vmem:[#allocation2 + $0x18] sm:$0xff] %v1345_v16 }
  0x42   : > { %363 = vst [vmem:[#allocation2 + $0x50] sm:$0xff] %v1345_v16  ;;  %364 = vst [vmem:[#allocation2 + $0x68] sm:$0xff] %v1345_v16 }
  0x43   : > { %365 = vst [vmem:[#allocation2 + $0x8] sm:$0xff] %v1345_v16  ;;  %366 = vst [vmem:[#allocation2 + $0x48] sm:$0xff] %v1345_v16 }
  0x44   : > { %367 = vst [vmem:[#allocation2 + $0x40] sm:$0xff] %v1345_v16  ;;  %368 = vst [vmem:[#allocation2 + $0x20] sm:$0xff] %v1345_v16 }
  0x45   : > { %369 = vst [vmem:[#allocation2 + $0x10] sm:$0xff] %v1345_v16  ;;  %370 = vst [vmem:[#allocation2 + $0x38] sm:$0xff] %v1345_v16 }
  0x46   : > { %371 = vst [vmem:[#allocation2 + $0x60] sm:$0xff] %v1345_v16  ;;  %372 = vst [vmem:[#allocation2 + $0x70] sm:$0xff] %v1345_v16 }
  0x47   : > { %373 = vst [vmem:[#allocation2 + $0x78] sm:$0xff] %v1345_v16  ;;  %374 = vst [vmem:[#allocation2 + $0x28] sm:$0xff] %v1345_v16 }
  0x48 PF: > { %s960_s0 = sshll.u32 %s1327_s20, 7  ;;  %v1227_v17 = vld [vmem:[%s1508_s27] sm:$0xff]   ;;  %v1229_v27 = vld [vmem:[%s1508_s27 + $0x8] sm:$0xff]   ;;  %v1231_v29 = vld [vmem:[%s1508_s27 + $0x10] sm:$0xff]   ;;  %p978_p5 = scmp.ne.s32.totalorder %s1327_s20, 1 }
  0x49   : > { %s376_s5 = sshra.s32 %s960_s0, 3  ;;  %v1228_v18 = vld [vmem:[%s1508_s27 + $0x20] sm:$0xff]   ;;  %1097 = vmatprep.mubr.bf16.mxu0 %v1227_v17  ;;  %v1230_v28 = vld [vmem:[%s1508_s27 + $0x28] sm:$0xff]   ;;  %v1232_v30 = vld [vmem:[%s1508_s27 + $0x30] sm:$0xff]  }
  0x4a   : > { %s961_s14 = sshll.u32 %s376_s5, 2  ;;  %1105 = vmatprep.mubr.bf16.mxu1 %v1228_v18  ;;  %v1233_v31 = vld [vmem:[%s1508_s27 + $0x18] sm:$0xff]   ;;  %v396_v37 = vld [vmem:[#allocation2 + $0x30] sm:$0xff]  ;;  %v397_v49 = vld [vmem:[#allocation2] sm:$0xff] }
  0x4b   : > { %s1519_s30 = scalar_lea.vmem %s1645_s1, %s961_s14  ;;  %v1234_v32 = vld [vmem:[%s1508_s27 + $0x38] sm:$0xff]   ;;  %v404_v38 = vld [vmem:[#allocation2 + $0x40] sm:$0xff]  ;;  %v402_v55 = vld [vmem:[#allocation2 + $0x8] sm:$0xff] }
  0x4c   : > { %v1219_v19 = vld [vmem:[%s1519_s30 + $0x38] sm:$0xff]   ;;  %v1220_v20 = vld [vmem:[%s1519_s30 + $0x30] sm:$0xff]   ;;  %v1221_v21 = vld [vmem:[%s1519_s30 + $0x28] sm:$0xff]  }
  0x4d   : > { %1081 = vmatprep.subr.bf16.mxu0 %v1219_v19  ;;  %1113 = vmatprep.subr.bf16.mxu1 %v1219_v19  ;;  %v1222_v22 = vld [vmem:[%s1519_s30 + $0x20] sm:$0xff]   ;;  %v1223_v23 = vld [vmem:[%s1519_s30 + $0x18] sm:$0xff]   ;;  %v1224_v24 = vld [vmem:[%s1519_s30 + $0x10] sm:$0xff]  }
  0x4e   : > { %1082 = vmatpush3.bf16.msra.mxu0 %v1219_v19  ;;  %1121 = vmatpush3.bf16.msra.mxu1 %v1219_v19  ;;  %v1225_v25 = vld [vmem:[%s1519_s30 + $0x8] sm:$0xff]   ;;  %v1226_v26 = vld [vmem:[%s1519_s30] sm:$0xff]   ;;  %v398_v33 = vld [vmem:[#allocation2 + $0x58] sm:$0xff] }
  0x4f   : > { %1083 = vmatprep.subr.bf16.mxu0 %v1220_v20  ;;  %1114 = vmatprep.subr.bf16.mxu1 %v1220_v20  ;;  %v406_v34 = vld [vmem:[#allocation2 + $0x10] sm:$0xff]  ;;  %v399_v43 = vld [vmem:[#allocation2 + $0x18] sm:$0xff]  ;;  %v405_v50 = vld [vmem:[#allocation2 + $0x20] sm:$0xff] }
  0x50   : > { %v407_v44 = vld [vmem:[#allocation2 + $0x38] sm:$0xff]  ;;  %v400_v61 = vld [vmem:[#allocation2 + $0x50] sm:$0xff]  ;;  %v408_v62 = vld [vmem:[#allocation2 + $0x60] sm:$0xff] }
  0x51   : > { %v410_v56 = vld [vmem:[#allocation2 + $0x78] sm:$0xff]  ;;  %v403_v3 = vld [vmem:[#allocation2 + $0x48] sm:$0xff]  ;;  %v409_v10 = vld [vmem:[#allocation2 + $0x70] sm:$0xff] }
  0x52   : > { %1084 = vmatpush3.bf16.msra.mxu0 %v1220_v20  ;;  %1122 = vmatpush3.bf16.msra.mxu1 %v1220_v20  ;;  %v411_v4 = vld [vmem:[#allocation2 + $0x28] sm:$0xff] }
  0x53   : > { %1085 = vmatprep.subr.bf16.mxu0 %v1221_v21  ;;  %1115 = vmatprep.subr.bf16.mxu1 %v1221_v21  ;;  %v401_v9 = vld [vmem:[#allocation2 + $0x68] sm:$0xff] }
  0x56   : > { %1086 = vmatpush3.bf16.msra.mxu0 %v1221_v21  ;;  %1123 = vmatpush3.bf16.msra.mxu1 %v1221_v21 }
  0x57   : > { %1087 = vmatprep.subr.bf16.mxu0 %v1222_v22  ;;  %1116 = vmatprep.subr.bf16.mxu1 %v1222_v22 }
  0x5a   : > { %1088 = vmatpush3.bf16.msra.mxu0 %v1222_v22  ;;  %1124 = vmatpush3.bf16.msra.mxu1 %v1222_v22 }
  0x5b   : > { %1089 = vmatprep.subr.bf16.mxu0 %v1223_v23  ;;  %1117 = vmatprep.subr.bf16.mxu1 %v1223_v23 }
  0x5e   : > { %1090 = vmatpush3.bf16.msra.mxu0 %v1223_v23  ;;  %1125 = vmatpush3.bf16.msra.mxu1 %v1223_v23 }
  0x5f   : > { %1091 = vmatprep.subr.bf16.mxu0 %v1224_v24  ;;  %1118 = vmatprep.subr.bf16.mxu1 %v1224_v24 }
  0x62   : > { %1092 = vmatpush3.bf16.msra.mxu0 %v1224_v24  ;;  %1126 = vmatpush3.bf16.msra.mxu1 %v1224_v24 }
  0x63   : > { %1093 = vmatprep.subr.bf16.mxu0 %v1225_v25  ;;  %1119 = vmatprep.subr.bf16.mxu1 %v1225_v25 }
  0x66   : > { %1094 = vmatpush3.bf16.msra.mxu0 %v1225_v25  ;;  %1127 = vmatpush3.bf16.msra.mxu1 %v1225_v25 }
  0x67   : > { %1095 = vmatprep.subr.bf16.mxu0 %v1226_v26  ;;  %1120 = vmatprep.subr.bf16.mxu1 %v1226_v26 }
  0x6a   : > { %1096 = vmatpush3.bf16.msra.mxu0 %v1226_v26  ;;  %1128 = vmatpush3.bf16.msra.mxu1 %v1226_v26 }
  0x6d   : > { %1098 = vmatmul.mubr.bf16.vlgmr.msra.gmra.mxu0 %v1229_v27  ;;  %1106 = vmatmul.mubr.bf16.vlgmr.msra.gmra.mxu1 %v1230_v28 }
  0x6e   : > { %1101 = vmatprep.mubr.bf16.mxu0 %v1231_v29  ;;  %1109 = vmatprep.mubr.bf16.mxu1 %v1232_v30 }
  0x75   : > { %1102 = vmatmul.mubr.bf16.gmra.mxu0 %v1233_v31  ;;  %1110 = vmatmul.mubr.bf16.gmra.mxu1 %v1234_v32 }
 0x12d   : > { %v1099_v35 = vpop.f32.mrf.mxu0  ;;  %v1107_v36 = vpop.f32.mrf.mxu1 }
 0x12e   : > { %v623_v39 = vadd.f32 %v1099_v35, %v398_v33  ;;  %v631_v40 = vadd.f32 %v1107_v36, %v406_v34 }
 0x12f   : > { %v558_v41 = vpop.f32.mrf.mxu0  ;;  %v590_v42 = vpop.f32.mrf.mxu1 }
 0x130   : > { %639 = vst [vmem:[#allocation2 + $0x58] sm:$0xff] %v623_v39  ;;  %647 = vst [vmem:[#allocation2 + $0x10] sm:$0xff] %v631_v40  ;;  %v621_v45 = vadd.f32 %v558_v41, %v396_v37  ;;  %v629_v46 = vadd.f32 %v590_v42, %v404_v38 }
 0x131   : > { %v1100_v47 = vpop.f32.mrf.mxu0  ;;  %v1108_v48 = vpop.f32.mrf.mxu1 }
 0x132   : > { %637 = vst [vmem:[#allocation2 + $0x30] sm:$0xff] %v621_v45  ;;  %645 = vst [vmem:[#allocation2 + $0x40] sm:$0xff] %v629_v46  ;;  %v624_v51 = vadd.f32 %v1100_v47, %v399_v43  ;;  %v632_v52 = vadd.f32 %v1108_v48, %v407_v44 }
 0x133   : > { %v561_v53 = vpop.f32.mrf.mxu0  ;;  %v593_v54 = vpop.f32.mrf.mxu1 }
 0x134   : > { %640 = vst [vmem:[#allocation2 + $0x18] sm:$0xff] %v624_v51  ;;  %648 = vst [vmem:[#allocation2 + $0x38] sm:$0xff] %v632_v52  ;;  %v622_v57 = vadd.f32 %v561_v53, %v397_v49  ;;  %v630_v58 = vadd.f32 %v593_v54, %v405_v50 }
 0x135   : > { %v1103_v59 = vpop.f32.mrf.mxu0  ;;  %v1111_v60 = vpop.f32.mrf.mxu1 }
 0x136   : > { %638 = vst [vmem:[#allocation2] sm:$0xff] %v622_v57  ;;  %646 = vst [vmem:[#allocation2 + $0x20] sm:$0xff] %v630_v58  ;;  %v627_v63 = vadd.f32 %v1103_v59, %v402_v55  ;;  %v635_v0 = vadd.f32 %v1111_v60, %v410_v56 }
 0x137   : > { %v574_v1 = vpop.f32.mrf.mxu0  ;;  %v606_v2 = vpop.f32.mrf.mxu1 }
 0x138   : > { %643 = vst [vmem:[#allocation2 + $0x8] sm:$0xff] %v627_v63  ;;  %651 = vst [vmem:[#allocation2 + $0x78] sm:$0xff] %v635_v0  ;;  %v625_v5 = vadd.f32 %v574_v1, %v400_v61  ;;  %v633_v6 = vadd.f32 %v606_v2, %v408_v62 }
 0x139   : > { %v1104_v7 = vpop.f32.mrf.mxu0  ;;  %v1112_v8 = vpop.f32.mrf.mxu1 }
 0x13a   : > { %641 = vst [vmem:[#allocation2 + $0x50] sm:$0xff] %v625_v5  ;;  %649 = vst [vmem:[#allocation2 + $0x60] sm:$0xff] %v633_v6  ;;  %v628_v11 = vadd.f32 %v1104_v7, %v403_v3  ;;  %v636_v12 = vadd.f32 %v1112_v8, %v411_v4  ;;  %656 = sbr.rel (%p978_p5) target bundleno = 339 (0x153), region = 81 }
 0x13b   : > { %v577_v13 = vpop.f32.mrf.mxu0  ;;  %v609_v14 = vpop.f32.mrf.mxu1 }
 0x13c   : > { %644 = vst [vmem:[#allocation2 + $0x48] sm:$0xff] %v628_v11  ;;  %652 = vst [vmem:[#allocation2 + $0x28] sm:$0xff] %v636_v12  ;;  %v626_v15 = vadd.f32 %v577_v13, %v401_v9  ;;  %v634_v16 = vadd.f32 %v609_v14, %v409_v10 }
 0x13e   : > { %642 = vst [vmem:[#allocation2 + $0x68] sm:$0xff] %v626_v15  ;;  %650 = vst [vmem:[#allocation2 + $0x70] sm:$0xff] %v634_v16 }
 0x13f   : > { %v657_v17 = vld [vmem:[#allocation2 + $0x30] sm:$0xff]  ;;  %v658_v18 = vld [vmem:[#allocation2] sm:$0xff]  ;;  %v754_v21 = vld [vmem:[%s1501_s6 + $0x8] sm:$0xff] }
 0x140   : > { %v753_v19 = vld [vmem:[%s1501_s6] sm:$0xff]  ;;  %v1021_v20 = vpack.c.bf16 %v658_v18, %v657_v17  ;;  %v659_v22 = vld [vmem:[#allocation2 + $0x58] sm:$0xff]  ;;  %v755_v25 = vld [vmem:[%s1501_s6 + $0x10] sm:$0xff]  ;;  %v770_v36 = vadd.f32 %v754_v21, %v658_v18 }
 0x141   : > { %v660_v23 = vld [vmem:[#allocation2 + $0x18] sm:$0xff]  ;;  %v661_v27 = vld [vmem:[#allocation2 + $0x50] sm:$0xff]  ;;  %v757_v29 = vld [vmem:[%s1501_s6 + $0x20] sm:$0xff]  ;;  %v769_v35 = vadd.f32 %v753_v19, %v657_v17  ;;  %v771_v37 = vadd.f32 %v755_v25, %v659_v22 }
 0x142   : > { %v1026_v24 = vpack.c.bf16 %v660_v23, %v659_v22  ;;  %v756_v26 = vld [vmem:[%s1501_s6 + $0x18] sm:$0xff]  ;;  %1022 = vst [vmem:[%s1510_s18] sm:$0xff] %v1021_v20   ;;  %v758_v30 = vld [vmem:[%s1501_s6 + $0x28] sm:$0xff]  ;;  %v759_v34 = vld [vmem:[%s1501_s6 + $0x30] sm:$0xff]  ;;  %v773_v43 = vadd.f32 %v757_v29, %v661_v27 }
 0x143   : > { %v663_v32 = vld [vmem:[#allocation2 + $0x8] sm:$0xff]  ;;  %v760_v39 = vld [vmem:[%s1501_s6 + $0x38] sm:$0xff]  ;;  %v665_v40 = vld [vmem:[#allocation2 + $0x40] sm:$0xff]  ;;  %v772_v42 = vadd.f32 %v756_v26, %v660_v23 }
 0x144   : > { %1058 = vst [vmem:[%s1510_s18 + $0x8] sm:$0xff] %v1026_v24   ;;  %v664_v33 = vld [vmem:[#allocation2 + $0x48] sm:$0xff]  ;;  %v666_v41 = vld [vmem:[#allocation2 + $0x20] sm:$0xff]  ;;  %v667_v48 = vld [vmem:[#allocation2 + $0x10] sm:$0xff]  ;;  %v775_v49 = vadd.f32 %v759_v34, %v663_v32 }
 0x145   : > { %v662_v28 = vld [vmem:[#allocation2 + $0x68] sm:$0xff]  ;;  %v1036_v38 = vpack.c.bf16 %v664_v33, %v663_v32  ;;  %v1041_v45 = vpack.c.bf16 %v666_v41, %v665_v40  ;;  %v761_v46 = vld [vmem:[%s1501_s6 + $0x40] sm:$0xff]  ;;  %v776_v50 = vadd.f32 %v760_v39, %v664_v33  ;;  %v668_v53 = vld [vmem:[#allocation2 + $0x38] sm:$0xff] }
 0x146   : > { %v1031_v31 = vpack.c.bf16 %v662_v28, %v661_v27  ;;  %v774_v44 = vadd.f32 %v758_v30, %v662_v28  ;;  %v762_v47 = vld [vmem:[%s1501_s6 + $0x48] sm:$0xff]  ;;  %v777_v51 = vadd.f32 %v761_v46, %v665_v40  ;;  %v763_v54 = vld [vmem:[%s1501_s6 + $0x50] sm:$0xff]  ;;  %v764_v55 = vld [vmem:[%s1501_s6 + $0x58] sm:$0xff]  ;;  %v1046_v56 = vpack.c.bf16 %v668_v53, %v667_v48 }
 0x147   : > { %1060 = vst [vmem:[%s1510_s18 + $0x18] sm:$0xff] %v1036_v38   ;;  %v778_v52 = vadd.f32 %v762_v47, %v666_v41  ;;  %1061 = vst [vmem:[%s1510_s18 + $0x20] sm:$0xff] %v1041_v45   ;;  %v779_v57 = vadd.f32 %v763_v54, %v667_v48  ;;  %v780_v58 = vadd.f32 %v764_v55, %v668_v53  ;;  %v669_v59 = vld [vmem:[#allocation2 + $0x60] sm:$0xff]  ;;  %v670_v60 = vld [vmem:[#allocation2 + $0x70] sm:$0xff] }
 0x148   : > { %1059 = vst [vmem:[%s1510_s18 + $0x10] sm:$0xff] %v1031_v31   ;;  %v765_v61 = vld [vmem:[%s1501_s6 + $0x60] sm:$0xff]  ;;  %v1051_v62 = vpack.c.bf16 %v670_v60, %v669_v59  ;;  %v766_v63 = vld [vmem:[%s1501_s6 + $0x68] sm:$0xff]  ;;  %v671_v1 = vld [vmem:[#allocation2 + $0x78] sm:$0xff] }
 0x149   : > { %v781_v0 = vadd.f32 %v765_v61, %v669_v59  ;;  %v672_v2 = vld [vmem:[#allocation2 + $0x28] sm:$0xff]  ;;  %1062 = vst [vmem:[%s1510_s18 + $0x28] sm:$0xff] %v1046_v56   ;;  %v782_v3 = vadd.f32 %v766_v63, %v670_v60  ;;  %v767_v5 = vld [vmem:[%s1501_s6 + $0x70] sm:$0xff]  ;;  %v768_v6 = vld [vmem:[%s1501_s6 + $0x78] sm:$0xff] }
 0x14a   : > { %v1056_v4 = vpack.c.bf16 %v672_v2, %v671_v1  ;;  %1063 = vst [vmem:[%s1510_s18 + $0x30] sm:$0xff] %v1051_v62   ;;  %v783_v7 = vadd.f32 %v767_v5, %v671_v1  ;;  %v784_v8 = vadd.f32 %v768_v6, %v672_v2  ;;  %785 = vst [vmem:[%s1506_s28] sm:$0xff] %v769_v35 }
 0x14b   : > { %786 = vst [vmem:[%s1506_s28 + $0x8] sm:$0xff] %v770_v36  ;;  %787 = vst [vmem:[%s1506_s28 + $0x10] sm:$0xff] %v771_v37 }
 0x14c   : > { %788 = vst [vmem:[%s1506_s28 + $0x18] sm:$0xff] %v772_v42  ;;  %789 = vst [vmem:[%s1506_s28 + $0x20] sm:$0xff] %v773_v43 }
 0x14d   : > { %790 = vst [vmem:[%s1506_s28 + $0x28] sm:$0xff] %v774_v44  ;;  %791 = vst [vmem:[%s1506_s28 + $0x30] sm:$0xff] %v775_v49 }
 0x14e   : > { %792 = vst [vmem:[%s1506_s28 + $0x38] sm:$0xff] %v776_v50  ;;  %793 = vst [vmem:[%s1506_s28 + $0x40] sm:$0xff] %v777_v51 }
 0x14f   : > { %794 = vst [vmem:[%s1506_s28 + $0x48] sm:$0xff] %v778_v52  ;;  %795 = vst [vmem:[%s1506_s28 + $0x50] sm:$0xff] %v779_v57 }
 0x150   : > { %796 = vst [vmem:[%s1506_s28 + $0x58] sm:$0xff] %v780_v58  ;;  %797 = vst [vmem:[%s1506_s28 + $0x60] sm:$0xff] %v781_v0 }
 0x151   : > { %1064 = vst [vmem:[%s1510_s18 + $0x38] sm:$0xff] %v1056_v4   ;;  %798 = vst [vmem:[%s1506_s28 + $0x68] sm:$0xff] %v782_v3 }
 0x152   : > { %799 = vst [vmem:[%s1506_s28 + $0x70] sm:$0xff] %v783_v7  ;;  %800 = vst [vmem:[%s1506_s28 + $0x78] sm:$0xff] %v784_v8 }
 0x153 PF: > { %s1017_s20 = sshll.u32 %s1331_s21, 10  ;;  %s820_s6 = sshll.u32 %s1510_s18, 4  ;;  %s1583_s6 = int_to_ptr.vmem [resolvable:$true] %s820_s6 }
 0x154   : > { %s1580_s9 = scalar_lea.hbm %s1647_s3, %s1017_s20  ;;  %s1587_s29 = scalar_lea.sflag [#allocation5], %s330_s13 }
 0x155   : > { %s1235_s28 = scalar_lea.vmem %s1583_s6, 1024  ;;  %s1346_s21 = smov [#allocation4]  }
 0x156   : > { %p1236_p6 = scmp.ne.s32.totalorder %s1583_s6, %s1235_s28  ;;  %s1239_s0 = sshll.u32 %s1346_s21, 4  ;;  %s1240_s0 = int_to_ptr.vmem [resolvable:$false] %s1239_s0 }
 0x157   : > { %s1241_s5 = scalar_lea.vmem %s1240_s0, 2048  ;;  %p1242_p10 = scmp.lt.s32.totalorder %s1583_s6, %s1240_s0 }
 0x158   : > { %p1237_p8 = pnand %p1236_p6, %p1446_p7  ;;  %p1243_p11 = scmp.lt.s32.totalorder %s1241_s5, %s1235_s28 }
 0x15a   : > { %p1238_p9 = pneg %p1237_p8  ;;  %p1244_p13 = por %p1243_p11, %p1242_p10 }
 0x15c   : > { %p1245_p0 = pnand %p1244_p13, %p1238_p9 }
 0x15e   : > { %1248 = shalt.err (!%p1245_p0)
}
 0x15f   : > { %s1249_s13 = scalar_lea.hbm %s1580_s9, 1024  ;;  %s1253_s25 = scalar_lea.hbm %s1647_s3, 2048 }
 0x160   : > { %p1250_p1 = scmp.ne.s32.totalorder %s1580_s9, %s1249_s13  ;;  %p1254_p4 = scmp.lt.s32.totalorder %s1580_s9, %s1647_s3 }
 0x161   : > { %p1255_p5 = scmp.lt.s32.totalorder %s1253_s25, %s1249_s13 }
 0x162   : > { %p1251_p2 = pnand %p1250_p1, %p1446_p7 }
 0x163   : > { %p1256_p6 = por %p1255_p5, %p1254_p4 }
 0x164   : > { %p1252_p3 = pneg %p1251_p2 }
 0x166   : > { %p1257_p8 = pnand %p1256_p6, %p1252_p3 }
 0x168   : > { %1260 = shalt.err (!%p1257_p8)
}
 0x169   : > { %s1347_s20 = smov 64   ;;  %s1348_s27 = smov 4  }
 0x16a   : > { %1129 = dma.vmem_to_hbm [thread:$0]  (%p1446_p7), %s1583_s6, 1024, %s1580_s9, %s1587_s29, %s1347_s20, %s1347_s20, %s1348_s27  }
 0x16b PF: > { %p1135_p9 = scmp.ge.s32.totalorder %s1343_s24, 2  ;;  %s839_s8 = sand.u32 1, %s1307_s15  }
 0x16c   : > { %s840_s28 = scalar_lea.sflag [#allocation5], %s839_s8 }
 0x16d   : > { %p1132_p10 = pnand %p1135_p9, %p1454_p12 }
 0x16f   : > { %p1133_p11 = pneg %p1132_p10 }
 0x171   : > { %1302 = dma.done.wait (%p1133_p11), %s840_s28, 1024  }
 0x172   : > { %1304 = vsyncadd (%p1133_p11), %s840_s28, 4294966272  ;;  %s18_s24 = sadd.s32 1, %s1343_s24   ;;  %s1658_s7 = sld [smem:[#allocation7_spill]] }
 0x173   : > { %p15_p13 = scmp.ge.s32.totalorder %s18_s24, 6   ;;  %s1659_s9 = sld [smem:[#allocation8_spill]] }
 0x174   : > { %s1660_s15 = smov %s1311_s16  ;;  %s1661_s16 = smov %s1315_s17 }
 0x175   : > { %s1662_s17 = smov %s1459_s11  ;;  %s1663_s18 = smov %s1323_s19 }
 0x176   : > { %s1664_s19 = smov %s1462_s12  ;;  %s1665_s20 = smov %s1335_s22 }
 0x177   : > { %s1666_s21 = smov %s1339_s23  ;;  %17 = sbr.rel (!%p15_p13) target bundleno = 8 (0x8), region = 137 }
 0x178   : > { %s1667_s22 = smov %s1658_s7 }
 0x179   : > { %s1668_s23 = smov %s1659_s9 }
 0x17c   :  { %853 = vsyncpa [#allocation5], 1 }
 0x17d   :  { %855 = vsyncpa [#allocation5 + $0x1], 1 }

// kernel: lightgcn_forward.3
= control target key start
LH: loop header
LB: loop body
LE: loop exit
PB: predicated region body
PF: predicated region fallthrough
CT: control target
= control target key end

     0   :  { %s1264_s15 = smov 0   ;;  %s1266_s16 = smov 0   ;;  %s1448_s0 = inlined_call_operand.vmem [shape: bf16[256,256], index: 0, kind: input, shape index: {}]   ;;  %s1449_s1 = inlined_call_operand.vmem [shape: bf16[256,128], index: 1, kind: input, shape index: {}]   ;;  %s1450_s2 = inlined_call_operand.vmem [shape: f32[256,128], index: 2, kind: input, shape index: {}, may-alias: {2,4}]   ;;  %s1451_s3 = inlined_call_operand.vmem [shape: bf16[256,128], index: 3, kind: output, shape index: {0}]   ;;  %s1452_s4 = inlined_call_operand.vmem [shape: f32[256,128], index: 4, kind: output, shape index: {1}, may-alias: {2,4}]  }
   0x1   :  { %s1268_s17 = smov 0   ;;  %s1270_s18 = smov 0  }
   0x2   :  { %s1272_s19 = smov 0   ;;  %s1274_s20 = smov 0  }
   0x3   :  { %s1276_s21 = smov 0  }
   0x4 LB: > { %s24_s22 = sadd.s32 1, %s1228_s19  ;;  %s27_s23 = sadd.s32 1, %s1232_s20  ;;  %s1236_s21 = sphi %s1276_s21, %s15_s21   ;;  %s1232_s20 = sphi %s1274_s20, %s1458_s20   ;;  %s1228_s19 = sphi %s1272_s19, %s1457_s19   ;;  %s1224_s18 = sphi %s1270_s18, %s1456_s18   ;;  %s1220_s17 = sphi %s1268_s17, %s1455_s17   ;;  %s1216_s16 = sphi %s1266_s16, %s1454_s16   ;;  %s1212_s15 = sphi %s1264_s15, %s1453_s15  }
   0x5   : > { %p25_p0 = scmp.ge.s32.totalorder %s24_s22, 2  ;;  %p43_p1 = scmp.ne.s32.totalorder %s1216_s16, %s1212_s15 }
   0x6   : > { %p44_p2 = scmp.eq.s32.totalorder %s1236_s21, 0  ;;  %s36_s27 = sadd.s32 1, %s1216_s16 }
   0x7   : > { %s1460_s22 = smov (%p25_p0, %s24_s22), 0  ;;  %s1462_s23 = smov (!%p25_p0, %s27_s23), %s1232_s20 }
   0x8   : > { %p45_p3 = por %p44_p2, %p43_p1  ;;  %p29_p4 = scmp.ge.s32.totalorder %s1462_s23, 2 }
   0x9   : > { %s32_s24 = ssub.s32 %s1228_s19, %s1460_s22  ;;  %p930_p6 = scmp.ge.s32.totalorder %s1236_s21, 4 }
   0xa   : > { %s1464_s23 = smov (%p29_p4, %s1462_s23), 0 }
   0xb   : > { %s31_s25 = ssub.s32 %s1232_s20, %s1464_s23  ;;  %171 = sbr.rel (%p930_p6) target bundleno = 32 (0x20), region = 20 }
   0xc   : > { %s33_s26 = sor.u32 %s32_s24, %s31_s25 }
   0xd   : > { %p34_p5 = scmp.eq.s32.totalorder %s33_s26, 0 }
   0xf   : > { %s1315_s28 = scalar_select %p34_p5, %s1216_s16, %s36_s27  }
  0x10   : > { %174 = sbr.rel (!%p45_p3) target bundleno = 32 (0x20), region = 24  ;;  %s176_s29 = sand.u32 (%p45_p3), 1, %s1216_s16  }
  0x11   : > { %s981_s30 = sshll.u32 (%p45_p3), %s1232_s20, 5  ;;  %s931_s5 = sshll.u32 (%p45_p3), %s176_s29, 6 }
  0x12   : > { %s181_s6 = sadd.s32 (%p45_p3), %s1228_s19, %s981_s30  ;;  %s178_s11 = scalar_lea.vmem (%p45_p3), [#allocation3], %s931_s5 }
  0x13   : > { %s934_s7 = sshll.u32 (%p45_p3), %s181_s6, 2 }
  0x14   : > { %s1324_s10 = scalar_lea.vmem (%p45_p3), %s1448_s0, %s934_s7 }
  0x15   : > { %v200_v0 = vld [vmem:[%s1324_s10] sm:$0xf]  ;;  %v202_v1 = vld [vmem:[%s1324_s10 + $0x8] sm:$0xf]  ;;  %v204_v2 = vld [vmem:[%s1324_s10 + $0x10] sm:$0xf] }
  0x16   : > { %201 = vst [vmem:[%s178_s11] sm:$0xf] %v200_v0  ;;  %203 = vst [vmem:[%s178_s11 + $0x4] sm:$0xf] %v202_v1  ;;  %v206_v3 = vld [vmem:[%s1324_s10 + $0x18] sm:$0xf] }
  0x17   : > { %205 = vst [vmem:[%s178_s11 + $0x8] sm:$0xf] %v204_v2  ;;  %v208_v4 = vld [vmem:[%s1324_s10 + $0x20] sm:$0xf]  ;;  %v210_v5 = vld [vmem:[%s1324_s10 + $0x28] sm:$0xf] }
  0x18   : > { %207 = vst [vmem:[%s178_s11 + $0xc] sm:$0xf] %v206_v3  ;;  %209 = vst [vmem:[%s178_s11 + $0x10] sm:$0xf] %v208_v4  ;;  %v212_v6 = vld [vmem:[%s1324_s10 + $0x30] sm:$0xf] }
  0x19   : > { %211 = vst [vmem:[%s178_s11 + $0x14] sm:$0xf] %v210_v5  ;;  %v214_v7 = vld [vmem:[%s1324_s10 + $0x38] sm:$0xf]  ;;  %v216_v8 = vld [vmem:[%s1324_s10 + $0x40] sm:$0xf] }
  0x1a   : > { %213 = vst [vmem:[%s178_s11 + $0x18] sm:$0xf] %v212_v6  ;;  %215 = vst [vmem:[%s178_s11 + $0x1c] sm:$0xf] %v214_v7  ;;  %v218_v9 = vld [vmem:[%s1324_s10 + $0x48] sm:$0xf] }
  0x1b   : > { %217 = vst [vmem:[%s178_s11 + $0x20] sm:$0xf] %v216_v8  ;;  %v220_v10 = vld [vmem:[%s1324_s10 + $0x50] sm:$0xf]  ;;  %v222_v11 = vld [vmem:[%s1324_s10 + $0x58] sm:$0xf] }
  0x1c   : > { %219 = vst [vmem:[%s178_s11 + $0x24] sm:$0xf] %v218_v9  ;;  %221 = vst [vmem:[%s178_s11 + $0x28] sm:$0xf] %v220_v10  ;;  %v224_v12 = vld [vmem:[%s1324_s10 + $0x60] sm:$0xf] }
  0x1d   : > { %223 = vst [vmem:[%s178_s11 + $0x2c] sm:$0xf] %v222_v11  ;;  %v226_v13 = vld [vmem:[%s1324_s10 + $0x68] sm:$0xf]  ;;  %v228_v14 = vld [vmem:[%s1324_s10 + $0x70] sm:$0xf] }
  0x1e   : > { %225 = vst [vmem:[%s178_s11 + $0x30] sm:$0xf] %v224_v12  ;;  %227 = vst [vmem:[%s178_s11 + $0x34] sm:$0xf] %v226_v13  ;;  %v230_v15 = vld [vmem:[%s1324_s10 + $0x78] sm:$0xf] }
  0x1f   : > { %229 = vst [vmem:[%s178_s11 + $0x38] sm:$0xf] %v228_v14  ;;  %231 = vst [vmem:[%s178_s11 + $0x3c] sm:$0xf] %v230_v15 }
  0x20 PF: > { %p935_p7 = scmp.ge.s32.totalorder %s1236_s21, 1  ;;  %p295_p8 = scmp.lt.s32.totalorder %s1236_s21, 5 }
  0x22   : > { %p296_p9 = pnand %p935_p7, %p295_p8 }
  0x23   : > { %s302_s12 = sand.u32 (!%p296_p9), 1, %s1212_s15   ;;  %s937_s13 = sshll.u32 (!%p296_p9), %s1224_s18, 4 }
  0x24   : > { %299 = sbr.rel (%p296_p9) target bundleno = 322 (0x142), region = 69  ;;  %s936_s14 = sshll.u32 (!%p296_p9), %s302_s12, 6 }
  0x25   : > { %p339_p10 = scmp.lt.s32.totalorder (!%p296_p9), %s937_s13, 31  ;;  %s1361_s18 = scalar_lea.vmem (!%p296_p9), [#allocation3], %s936_s14 }
  0x26   : > { %p943_p11 = scmp.ne.s32.totalorder (!%p296_p9), %s1220_s17, 0 }
  0x29   : > { %s1466_s13 = smov (!%p339_p10, %s937_s13), 31  ;;  %360 = sbr.rel (%p943_p11) target bundleno = 55 (0x37), region = 77 }
  0x2a   : > { %s938_s24 = sshll.u32 %s1466_s13, 3  ;;  %s940_s25 = sshll.u32 %s1466_s13, 2 }
  0x2b   : > { %s1349_s29 = scalar_lea.vmem %s1450_s2, %s938_s24  ;;  %s1354_s6 = scalar_lea.vmem %s1451_s3, %s940_s25 }
  0x2c   : > { %s1359_s15 = scalar_lea.vmem %s1452_s4, %s938_s24 }
  0x2e   : > { %v1238_v16 = vmov 0.0  }
  0x2f   : > { %361 = vst [vmem:[#allocation2 + $0x30] sm:$0xff] %v1238_v16  ;;  %362 = vst [vmem:[#allocation2] sm:$0xff] %v1238_v16 }
  0x30   : > { %363 = vst [vmem:[#allocation2 + $0x58] sm:$0xff] %v1238_v16  ;;  %364 = vst [vmem:[#allocation2 + $0x18] sm:$0xff] %v1238_v16 }
  0x31   : > { %365 = vst [vmem:[#allocation2 + $0x50] sm:$0xff] %v1238_v16  ;;  %366 = vst [vmem:[#allocation2 + $0x68] sm:$0xff] %v1238_v16 }
  0x32   : > { %367 = vst [vmem:[#allocation2 + $0x8] sm:$0xff] %v1238_v16  ;;  %368 = vst [vmem:[#allocation2 + $0x48] sm:$0xff] %v1238_v16 }
  0x33   : > { %369 = vst [vmem:[#allocation2 + $0x40] sm:$0xff] %v1238_v16  ;;  %370 = vst [vmem:[#allocation2 + $0x20] sm:$0xff] %v1238_v16 }
  0x34   : > { %371 = vst [vmem:[#allocation2 + $0x10] sm:$0xff] %v1238_v16  ;;  %372 = vst [vmem:[#allocation2 + $0x38] sm:$0xff] %v1238_v16 }
  0x35   : > { %373 = vst [vmem:[#allocation2 + $0x60] sm:$0xff] %v1238_v16  ;;  %374 = vst [vmem:[#allocation2 + $0x70] sm:$0xff] %v1238_v16 }
  0x36   : > { %375 = vst [vmem:[#allocation2 + $0x78] sm:$0xff] %v1238_v16  ;;  %376 = vst [vmem:[#allocation2 + $0x28] sm:$0xff] %v1238_v16 }
  0x37 PF: > { %s944_s9 = sshll.u32 %s1220_s17, 7  ;;  %v1174_v17 = vld [vmem:[%s1361_s18] sm:$0xff]   ;;  %v1176_v27 = vld [vmem:[%s1361_s18 + $0x8] sm:$0xff]   ;;  %v1178_v29 = vld [vmem:[%s1361_s18 + $0x10] sm:$0xff]   ;;  %p962_p12 = scmp.ne.s32.totalorder %s1220_s17, 1 }
  0x38   : > { %s378_s10 = sshra.s32 %s944_s9, 3  ;;  %v1175_v18 = vld [vmem:[%s1361_s18 + $0x20] sm:$0xff]   ;;  %1077 = vmatprep.mubr.bf16.mxu0 %v1174_v17  ;;  %v1177_v28 = vld [vmem:[%s1361_s18 + $0x28] sm:$0xff]   ;;  %v1179_v30 = vld [vmem:[%s1361_s18 + $0x30] sm:$0xff]  }
  0x39   : > { %s945_s11 = sshll.u32 %s378_s10, 2  ;;  %1085 = vmatprep.mubr.bf16.mxu1 %v1175_v18  ;;  %v1180_v31 = vld [vmem:[%s1361_s18 + $0x18] sm:$0xff]   ;;  %v398_v37 = vld [vmem:[#allocation2 + $0x30] sm:$0xff]  ;;  %v399_v49 = vld [vmem:[#allocation2] sm:$0xff] }
  0x3a   : > { %s1370_s14 = scalar_lea.vmem %s1449_s1, %s945_s11  ;;  %v1181_v32 = vld [vmem:[%s1361_s18 + $0x38] sm:$0xff]   ;;  %v406_v38 = vld [vmem:[#allocation2 + $0x40] sm:$0xff]  ;;  %v404_v55 = vld [vmem:[#allocation2 + $0x8] sm:$0xff] }
  0x3b   : > { %v1166_v19 = vld [vmem:[%s1370_s14 + $0x38] sm:$0xff]   ;;  %v1167_v20 = vld [vmem:[%s1370_s14 + $0x30] sm:$0xff]   ;;  %v1168_v21 = vld [vmem:[%s1370_s14 + $0x28] sm:$0xff]  }
  0x3c   : > { %1061 = vmatprep.subr.bf16.mxu0 %v1166_v19  ;;  %1093 = vmatprep.subr.bf16.mxu1 %v1166_v19  ;;  %v1169_v22 = vld [vmem:[%s1370_s14 + $0x20] sm:$0xff]   ;;  %v1170_v23 = vld [vmem:[%s1370_s14 + $0x18] sm:$0xff]   ;;  %v1171_v24 = vld [vmem:[%s1370_s14 + $0x10] sm:$0xff]  }
  0x3d   : > { %1062 = vmatpush3.bf16.msra.mxu0 %v1166_v19  ;;  %1101 = vmatpush3.bf16.msra.mxu1 %v1166_v19  ;;  %v1172_v25 = vld [vmem:[%s1370_s14 + $0x8] sm:$0xff]   ;;  %v1173_v26 = vld [vmem:[%s1370_s14] sm:$0xff]   ;;  %v400_v33 = vld [vmem:[#allocation2 + $0x58] sm:$0xff] }
  0x3e   : > { %1063 = vmatprep.subr.bf16.mxu0 %v1167_v20  ;;  %1094 = vmatprep.subr.bf16.mxu1 %v1167_v20  ;;  %v408_v34 = vld [vmem:[#allocation2 + $0x10] sm:$0xff]  ;;  %v401_v43 = vld [vmem:[#allocation2 + $0x18] sm:$0xff]  ;;  %v407_v50 = vld [vmem:[#allocation2 + $0x20] sm:$0xff] }
  0x3f   : > { %v409_v44 = vld [vmem:[#allocation2 + $0x38] sm:$0xff]  ;;  %v402_v61 = vld [vmem:[#allocation2 + $0x50] sm:$0xff]  ;;  %v410_v62 = vld [vmem:[#allocation2 + $0x60] sm:$0xff] }
  0x40   : > { %v412_v56 = vld [vmem:[#allocation2 + $0x78] sm:$0xff]  ;;  %v405_v3 = vld [vmem:[#allocation2 + $0x48] sm:$0xff]  ;;  %v411_v10 = vld [vmem:[#allocation2 + $0x70] sm:$0xff] }
  0x41   : > { %1064 = vmatpush3.bf16.msra.mxu0 %v1167_v20  ;;  %1102 = vmatpush3.bf16.msra.mxu1 %v1167_v20  ;;  %v413_v4 = vld [vmem:[#allocation2 + $0x28] sm:$0xff] }
  0x42   : > { %1065 = vmatprep.subr.bf16.mxu0 %v1168_v21  ;;  %1095 = vmatprep.subr.bf16.mxu1 %v1168_v21  ;;  %v403_v9 = vld [vmem:[#allocation2 + $0x68] sm:$0xff] }
  0x45   : > { %1066 = vmatpush3.bf16.msra.mxu0 %v1168_v21  ;;  %1103 = vmatpush3.bf16.msra.mxu1 %v1168_v21 }
  0x46   : > { %1067 = vmatprep.subr.bf16.mxu0 %v1169_v22  ;;  %1096 = vmatprep.subr.bf16.mxu1 %v1169_v22 }
  0x49   : > { %1068 = vmatpush3.bf16.msra.mxu0 %v1169_v22  ;;  %1104 = vmatpush3.bf16.msra.mxu1 %v1169_v22 }
  0x4a   : > { %1069 = vmatprep.subr.bf16.mxu0 %v1170_v23  ;;  %1097 = vmatprep.subr.bf16.mxu1 %v1170_v23 }
  0x4d   : > { %1070 = vmatpush3.bf16.msra.mxu0 %v1170_v23  ;;  %1105 = vmatpush3.bf16.msra.mxu1 %v1170_v23 }
  0x4e   : > { %1071 = vmatprep.subr.bf16.mxu0 %v1171_v24  ;;  %1098 = vmatprep.subr.bf16.mxu1 %v1171_v24 }
  0x51   : > { %1072 = vmatpush3.bf16.msra.mxu0 %v1171_v24  ;;  %1106 = vmatpush3.bf16.msra.mxu1 %v1171_v24 }
  0x52   : > { %1073 = vmatprep.subr.bf16.mxu0 %v1172_v25  ;;  %1099 = vmatprep.subr.bf16.mxu1 %v1172_v25 }
  0x55   : > { %1074 = vmatpush3.bf16.msra.mxu0 %v1172_v25  ;;  %1107 = vmatpush3.bf16.msra.mxu1 %v1172_v25 }
  0x56   : > { %1075 = vmatprep.subr.bf16.mxu0 %v1173_v26  ;;  %1100 = vmatprep.subr.bf16.mxu1 %v1173_v26 }
  0x59   : > { %1076 = vmatpush3.bf16.msra.mxu0 %v1173_v26  ;;  %1108 = vmatpush3.bf16.msra.mxu1 %v1173_v26 }
  0x5c   : > { %1078 = vmatmul.mubr.bf16.vlgmr.msra.gmra.mxu0 %v1176_v27  ;;  %1086 = vmatmul.mubr.bf16.vlgmr.msra.gmra.mxu1 %v1177_v28 }
  0x5d   : > { %1081 = vmatprep.mubr.bf16.mxu0 %v1178_v29  ;;  %1089 = vmatprep.mubr.bf16.mxu1 %v1179_v30 }
  0x64   : > { %1082 = vmatmul.mubr.bf16.gmra.mxu0 %v1180_v31  ;;  %1090 = vmatmul.mubr.bf16.gmra.mxu1 %v1181_v32 }
 0x11c   : > { %v1079_v35 = vpop.f32.mrf.mxu0  ;;  %v1087_v36 = vpop.f32.mrf.mxu1 }
 0x11d   : > { %v625_v39 = vadd.f32 %v1079_v35, %v400_v33  ;;  %v633_v40 = vadd.f32 %v1087_v36, %v408_v34 }
 0x11e   : > { %v560_v41 = vpop.f32.mrf.mxu0  ;;  %v592_v42 = vpop.f32.mrf.mxu1 }
 0x11f   : > { %641 = vst [vmem:[#allocation2 + $0x58] sm:$0xff] %v625_v39  ;;  %649 = vst [vmem:[#allocation2 + $0x10] sm:$0xff] %v633_v40  ;;  %v623_v45 = vadd.f32 %v560_v41, %v398_v37  ;;  %v631_v46 = vadd.f32 %v592_v42, %v406_v38 }
 0x120   : > { %v1080_v47 = vpop.f32.mrf.mxu0  ;;  %v1088_v48 = vpop.f32.mrf.mxu1 }
 0x121   : > { %639 = vst [vmem:[#allocation2 + $0x30] sm:$0xff] %v623_v45  ;;  %647 = vst [vmem:[#allocation2 + $0x40] sm:$0xff] %v631_v46  ;;  %v626_v51 = vadd.f32 %v1080_v47, %v401_v43  ;;  %v634_v52 = vadd.f32 %v1088_v48, %v409_v44 }
 0x122   : > { %v563_v53 = vpop.f32.mrf.mxu0  ;;  %v595_v54 = vpop.f32.mrf.mxu1 }
 0x123   : > { %642 = vst [vmem:[#allocation2 + $0x18] sm:$0xff] %v626_v51  ;;  %650 = vst [vmem:[#allocation2 + $0x38] sm:$0xff] %v634_v52  ;;  %v624_v57 = vadd.f32 %v563_v53, %v399_v49  ;;  %v632_v58 = vadd.f32 %v595_v54, %v407_v50 }
 0x124   : > { %v1083_v59 = vpop.f32.mrf.mxu0  ;;  %v1091_v60 = vpop.f32.mrf.mxu1 }
 0x125   : > { %640 = vst [vmem:[#allocation2] sm:$0xff] %v624_v57  ;;  %648 = vst [vmem:[#allocation2 + $0x20] sm:$0xff] %v632_v58  ;;  %v629_v63 = vadd.f32 %v1083_v59, %v404_v55  ;;  %v637_v0 = vadd.f32 %v1091_v60, %v412_v56 }
 0x126   : > { %v576_v1 = vpop.f32.mrf.mxu0  ;;  %v608_v2 = vpop.f32.mrf.mxu1 }
 0x127   : > { %645 = vst [vmem:[#allocation2 + $0x8] sm:$0xff] %v629_v63  ;;  %653 = vst [vmem:[#allocation2 + $0x78] sm:$0xff] %v637_v0  ;;  %v627_v5 = vadd.f32 %v576_v1, %v402_v61  ;;  %v635_v6 = vadd.f32 %v608_v2, %v410_v62 }
 0x128   : > { %v1084_v7 = vpop.f32.mrf.mxu0  ;;  %v1092_v8 = vpop.f32.mrf.mxu1 }
 0x129   : > { %643 = vst [vmem:[#allocation2 + $0x50] sm:$0xff] %v627_v5  ;;  %651 = vst [vmem:[#allocation2 + $0x60] sm:$0xff] %v635_v6  ;;  %v630_v11 = vadd.f32 %v1084_v7, %v405_v3  ;;  %v638_v12 = vadd.f32 %v1092_v8, %v413_v4  ;;  %658 = sbr.rel (%p962_p12) target bundleno = 322 (0x142), region = 81 }
 0x12a   : > { %v579_v13 = vpop.f32.mrf.mxu0  ;;  %v611_v14 = vpop.f32.mrf.mxu1 }
 0x12b   : > { %646 = vst [vmem:[#allocation2 + $0x48] sm:$0xff] %v630_v11  ;;  %654 = vst [vmem:[#allocation2 + $0x28] sm:$0xff] %v638_v12  ;;  %v628_v15 = vadd.f32 %v579_v13, %v403_v9  ;;  %v636_v16 = vadd.f32 %v611_v14, %v411_v10 }
 0x12d   : > { %644 = vst [vmem:[#allocation2 + $0x68] sm:$0xff] %v628_v15  ;;  %652 = vst [vmem:[#allocation2 + $0x70] sm:$0xff] %v636_v16 }
 0x12e   : > { %v659_v17 = vld [vmem:[#allocation2 + $0x30] sm:$0xff]  ;;  %v660_v18 = vld [vmem:[#allocation2] sm:$0xff]  ;;  %v756_v21 = vld [vmem:[%s1349_s29 + $0x8] sm:$0xff] }
 0x12f   : > { %v755_v19 = vld [vmem:[%s1349_s29] sm:$0xff]  ;;  %v1001_v20 = vpack.c.bf16 %v660_v18, %v659_v17  ;;  %v661_v22 = vld [vmem:[#allocation2 + $0x58] sm:$0xff]  ;;  %v757_v25 = vld [vmem:[%s1349_s29 + $0x10] sm:$0xff]  ;;  %v772_v36 = vadd.f32 %v756_v21, %v660_v18 }
 0x130   : > { %v662_v23 = vld [vmem:[#allocation2 + $0x18] sm:$0xff]  ;;  %v663_v27 = vld [vmem:[#allocation2 + $0x50] sm:$0xff]  ;;  %v759_v29 = vld [vmem:[%s1349_s29 + $0x20] sm:$0xff]  ;;  %v771_v35 = vadd.f32 %v755_v19, %v659_v17  ;;  %v773_v37 = vadd.f32 %v757_v25, %v661_v22 }
 0x131   : > { %v1006_v24 = vpack.c.bf16 %v662_v23, %v661_v22  ;;  %v758_v26 = vld [vmem:[%s1349_s29 + $0x18] sm:$0xff]  ;;  %1002 = vst [vmem:[%s1354_s6] sm:$0xff] %v1001_v20   ;;  %v760_v30 = vld [vmem:[%s1349_s29 + $0x28] sm:$0xff]  ;;  %v761_v34 = vld [vmem:[%s1349_s29 + $0x30] sm:$0xff]  ;;  %v775_v43 = vadd.f32 %v759_v29, %v663_v27 }
 0x132   : > { %v665_v32 = vld [vmem:[#allocation2 + $0x8] sm:$0xff]  ;;  %v762_v39 = vld [vmem:[%s1349_s29 + $0x38] sm:$0xff]  ;;  %v667_v40 = vld [vmem:[#allocation2 + $0x40] sm:$0xff]  ;;  %v774_v42 = vadd.f32 %v758_v26, %v662_v23 }
 0x133   : > { %1038 = vst [vmem:[%s1354_s6 + $0x8] sm:$0xff] %v1006_v24   ;;  %v666_v33 = vld [vmem:[#allocation2 + $0x48] sm:$0xff]  ;;  %v668_v41 = vld [vmem:[#allocation2 + $0x20] sm:$0xff]  ;;  %v669_v48 = vld [vmem:[#allocation2 + $0x10] sm:$0xff]  ;;  %v777_v49 = vadd.f32 %v761_v34, %v665_v32 }
 0x134   : > { %v664_v28 = vld [vmem:[#allocation2 + $0x68] sm:$0xff]  ;;  %v1016_v38 = vpack.c.bf16 %v666_v33, %v665_v32  ;;  %v1021_v45 = vpack.c.bf16 %v668_v41, %v667_v40  ;;  %v763_v46 = vld [vmem:[%s1349_s29 + $0x40] sm:$0xff]  ;;  %v778_v50 = vadd.f32 %v762_v39, %v666_v33  ;;  %v670_v53 = vld [vmem:[#allocation2 + $0x38] sm:$0xff] }
 0x135   : > { %v1011_v31 = vpack.c.bf16 %v664_v28, %v663_v27  ;;  %v776_v44 = vadd.f32 %v760_v30, %v664_v28  ;;  %v764_v47 = vld [vmem:[%s1349_s29 + $0x48] sm:$0xff]  ;;  %v779_v51 = vadd.f32 %v763_v46, %v667_v40  ;;  %v765_v54 = vld [vmem:[%s1349_s29 + $0x50] sm:$0xff]  ;;  %v766_v55 = vld [vmem:[%s1349_s29 + $0x58] sm:$0xff]  ;;  %v1026_v56 = vpack.c.bf16 %v670_v53, %v669_v48 }
 0x136   : > { %1040 = vst [vmem:[%s1354_s6 + $0x18] sm:$0xff] %v1016_v38   ;;  %v780_v52 = vadd.f32 %v764_v47, %v668_v41  ;;  %1041 = vst [vmem:[%s1354_s6 + $0x20] sm:$0xff] %v1021_v45   ;;  %v781_v57 = vadd.f32 %v765_v54, %v669_v48  ;;  %v782_v58 = vadd.f32 %v766_v55, %v670_v53  ;;  %v671_v59 = vld [vmem:[#allocation2 + $0x60] sm:$0xff]  ;;  %v672_v60 = vld [vmem:[#allocation2 + $0x70] sm:$0xff] }
 0x137   : > { %1039 = vst [vmem:[%s1354_s6 + $0x10] sm:$0xff] %v1011_v31   ;;  %v767_v61 = vld [vmem:[%s1349_s29 + $0x60] sm:$0xff]  ;;  %v1031_v62 = vpack.c.bf16 %v672_v60, %v671_v59  ;;  %v768_v63 = vld [vmem:[%s1349_s29 + $0x68] sm:$0xff]  ;;  %v673_v1 = vld [vmem:[#allocation2 + $0x78] sm:$0xff] }
 0x138   : > { %v783_v0 = vadd.f32 %v767_v61, %v671_v59  ;;  %v674_v2 = vld [vmem:[#allocation2 + $0x28] sm:$0xff]  ;;  %1042 = vst [vmem:[%s1354_s6 + $0x28] sm:$0xff] %v1026_v56   ;;  %v784_v3 = vadd.f32 %v768_v63, %v672_v60  ;;  %v769_v5 = vld [vmem:[%s1349_s29 + $0x70] sm:$0xff]  ;;  %v770_v6 = vld [vmem:[%s1349_s29 + $0x78] sm:$0xff] }
 0x139   : > { %v1036_v4 = vpack.c.bf16 %v674_v2, %v673_v1  ;;  %1043 = vst [vmem:[%s1354_s6 + $0x30] sm:$0xff] %v1031_v62   ;;  %v785_v7 = vadd.f32 %v769_v5, %v673_v1  ;;  %v786_v8 = vadd.f32 %v770_v6, %v674_v2  ;;  %787 = vst [vmem:[%s1359_s15] sm:$0xff] %v771_v35 }
 0x13a   : > { %788 = vst [vmem:[%s1359_s15 + $0x8] sm:$0xff] %v772_v36  ;;  %789 = vst [vmem:[%s1359_s15 + $0x10] sm:$0xff] %v773_v37 }
 0x13b   : > { %790 = vst [vmem:[%s1359_s15 + $0x18] sm:$0xff] %v774_v42  ;;  %791 = vst [vmem:[%s1359_s15 + $0x20] sm:$0xff] %v775_v43 }
 0x13c   : > { %792 = vst [vmem:[%s1359_s15 + $0x28] sm:$0xff] %v776_v44  ;;  %793 = vst [vmem:[%s1359_s15 + $0x30] sm:$0xff] %v777_v49 }
 0x13d   : > { %794 = vst [vmem:[%s1359_s15 + $0x38] sm:$0xff] %v778_v50  ;;  %795 = vst [vmem:[%s1359_s15 + $0x40] sm:$0xff] %v779_v51 }
 0x13e   : > { %796 = vst [vmem:[%s1359_s15 + $0x48] sm:$0xff] %v780_v52  ;;  %797 = vst [vmem:[%s1359_s15 + $0x50] sm:$0xff] %v781_v57 }
 0x13f   : > { %798 = vst [vmem:[%s1359_s15 + $0x58] sm:$0xff] %v782_v58  ;;  %799 = vst [vmem:[%s1359_s15 + $0x60] sm:$0xff] %v783_v0 }
 0x140   : > { %1044 = vst [vmem:[%s1354_s6 + $0x38] sm:$0xff] %v1036_v4   ;;  %800 = vst [vmem:[%s1359_s15 + $0x68] sm:$0xff] %v784_v3 }
 0x141   : > { %801 = vst [vmem:[%s1359_s15 + $0x70] sm:$0xff] %v785_v7  ;;  %802 = vst [vmem:[%s1359_s15 + $0x78] sm:$0xff] %v786_v8 }
 0x142 PF: > { %s15_s21 = sadd.s32 1, %s1236_s21   ;;  %s1453_s15 = smov %s1216_s16 }
 0x143   : > { %p12_p13 = scmp.ge.s32.totalorder %s15_s21, 6   ;;  %s1454_s16 = smov %s1315_s28 }
 0x144   : > { %s1455_s17 = smov %s1228_s19  ;;  %s1456_s18 = smov %s1232_s20 }
 0x145   : > { %s1457_s19 = smov %s1460_s22  ;;  %s1458_s20 = smov %s1464_s23 }
 0x146   :  { %14 = sbr.rel (!%p12_p13) target bundleno = 4 (0x4), region = 132 }

</bundles_post_ra>
